<compile_context>
chip_gen: v6e
topology: v6e:2x2x1
jax: 0.10.0
libtpu: 0.0.40
codegen_flags: <defaults>
</compile_context>

<pallas_src>
import jax
import jax.numpy as jnp
from jax.experimental import pallas as pl
from jax.experimental.pallas import tpu as pltpu

VEC_DIM = 25   # glove-twitter-25 vector_size
OUT_DIM = 2    # self.output_dim


def _round_up(x, m):
    return ((x + m - 1) // m) * m


def _w2v_kernel(x_ref, b_ref, out_ref):
    # x_ref  : [OUT_DIM, S, bt]  per-token projected logits, batch on lanes.
    # b_ref  : [OUT_DIM, 1]      bias column, broadcast across lanes.
    # out_ref: [OUT_DIM, bt]
    # Bag-of-words = sum over the sequence (sublane) axis, then bias add.
    out_ref[...] = jnp.sum(x_ref[...], axis=1) + b_ref[...]


def w2v_classifier_forward(token_ids, emb_table, weight, bias, *,
                           block_b=None, vmem_tile_bytes=4 * 1024 * 1024):
    """Forward pass of W2VClassifier.

    token_ids : [B, S] int32    (0 == OOV / padding -> contributes nothing)
    emb_table : [VOCAB, 25] f32 (pretrained word2vec vectors)
    weight    : [2, 25] f32     (torch nn.Linear layout [out, in])
    bias      : [2] f32
    returns   : [B, 2] f32 logits
    """
    assert weight.shape[1] == emb_table.shape[1]
    out_dim = weight.shape[0]
    B, S = token_ids.shape

    # Fold the Linear weight into the embedding table; force row 0 (the OOV /
    # padding sentinel) to zero so those tokens contribute nothing.
    proj_table = jnp.dot(emb_table, weight.T).at[0].set(0.0)   # [VOCAB, out_dim]

    # Batch tile sits on the lane axis -> multiple of 128.  Size it for
    # multi-MiB DMAs; for small B the whole (padded) batch is one grid step.
    row_bytes = out_dim * S * 4
    if block_b is None:
        block_b = max(128, (vmem_tile_bytes // row_bytes) // 128 * 128)
    bt = min(_round_up(block_b, 128), _round_up(B, 128))
    b_pad = _round_up(B, bt)

    ids = jnp.pad(token_ids, ((0, b_pad - B), (0, 0)))         # pad rows -> id 0

    # Gather per-token projected logits directly in the transposed, lane-dense
    # [out_dim, S, b_pad] layout (no separate transpose pass over HBM).
    x = jnp.take(proj_table.T, ids.T, axis=1)                  # [out_dim, S, b_pad]

    bias_col = bias.reshape(out_dim, 1).astype(jnp.float32)

    out = pl.pallas_call(
        _w2v_kernel,
        out_shape=jax.ShapeDtypeStruct((out_dim, b_pad), jnp.float32),
        grid=(b_pad // bt,),
        in_specs=[
            pl.BlockSpec((out_dim, S, bt), lambda i: (0, 0, i)),
            pl.BlockSpec((out_dim, 1), lambda i: (0, 0)),
        ],
        out_specs=pl.BlockSpec((out_dim, bt), lambda i: (0, i)),
        compiler_params=pltpu.CompilerParams(
            dimension_semantics=("parallel",)),   # megacore split on v7x
    )(x, bias_col)

    return out[:, :B].T                                        # [B, out_dim]


if __name__ == "__main__":
    key = jax.random.PRNGKey(0)
    k_emb, k_w, k_b, k_tok = jax.random.split(key, 4)

    VOCAB = 50
    BATCH = 200
    SEQ = 8

    # Embedding table emulating the pretrained word2vec vectors.  Row 0 is the
    # OOV/padding vector (zeroed again inside the wrapper for safety).
    emb_table = jax.random.normal(k_emb, (VOCAB, VEC_DIM), dtype=jnp.float32)
    emb_table = emb_table.at[0].set(0.0)

    # nn.Linear(25, 2) params (uniform +-1/sqrt(in), torch layout [out, in]).
    bound = 1.0 / (VEC_DIM ** 0.5)
    weight = jax.random.uniform(
        k_w, (OUT_DIM, VEC_DIM), minval=-bound, maxval=bound, dtype=jnp.float32
    )
    bias = jax.random.uniform(
        k_b, (OUT_DIM,), minval=-bound, maxval=bound, dtype=jnp.float32
    )

    # Deterministic "tokenized sentences": integer ids, some OOV (id 0).
    token_ids = jax.random.randint(
        k_tok, (BATCH, SEQ), minval=0, maxval=VOCAB, dtype=jnp.int32
    )

    # block_b=128 exercises the batch grid (200 -> padded 256, 2 grid steps);
    # production use would leave block_b=None for multi-MiB tiles.
    out = w2v_classifier_forward(token_ids, emb_table, weight, bias, block_b=128)
    out = jax.block_until_ready(out)

    # Pure-JAX reference matching the PyTorch module: gather 25-d vectors,
    # bag-of-words sum, then the Linear layer.
    ref = jnp.sum(jnp.take(emb_table, token_ids, axis=0), axis=1) @ weight.T + bias

    assert out.shape == (BATCH, OUT_DIM)
    assert jnp.allclose(out, ref, atol=1e-4, rtol=1e-4), float(
        jnp.max(jnp.abs(out - ref))
    )

    print("KERNEL_OK")
</pallas_src>

<mosaic_0001>
module attributes {stable_mosaic.version = 11 : i64} {
  func.func @_w2v_kernel(%arg0: i32, %arg1: memref<2x8x128xf32, #tpu.memory_space<vmem>>, %arg2: memref<2x1xf32, #tpu.memory_space<vmem>>, %arg3: memref<2x128xf32, #tpu.memory_space<vmem>>) attributes {dimension_semantics = [#tpu.dimension_semantics<parallel>], iteration_bounds = array<i64: 2>, scalar_prefetch = 0 : i64, scratch_operands = 0 : i64, tpu.core_type = #tpu.core_type<tc>, window_params = [{transform_indices = @transform_0, window_bounds = array<i64: 2, 8, 128>}, {pipeline_mode = #tpu.pipeline_mode<synchronous>, transform_indices = @transform_1, window_bounds = array<i64: 2, 1>}, {transform_indices = @transform_2, window_bounds = array<i64: 2, 128>}]} {
    %c0 = arith.constant 0 : index
    %c0_0 = arith.constant 0 : index
    %c0_1 = arith.constant 0 : index
    %0 = vector.load %arg1[%c0, %c0_0, %c0_1] : memref<2x8x128xf32, #tpu.memory_space<vmem>>, vector<2x8x128xf32>
    %cst = arith.constant dense<0.000000e+00> : vector<2x128xf32>
    %1 = vector.multi_reduction <add>, %0, %cst [1] : vector<2x8x128xf32> to vector<2x128xf32>
    %c0_2 = arith.constant 0 : index
    %c0_3 = arith.constant 0 : index
    %2 = vector.load %arg2[%c0_2, %c0_3] : memref<2x1xf32, #tpu.memory_space<vmem>>, vector<2x1xf32>
    %3 = vector.broadcast %2 : vector<2x1xf32> to vector<2x128xf32>
    %4 = arith.addf %1, %3 : vector<2x128xf32>
    %c0_4 = arith.constant 0 : index
    %c0_5 = arith.constant 0 : index
    %5 = vector.load %arg3[%c0_4, %c0_5] : memref<2x128xf32, #tpu.memory_space<vmem>>, vector<2x128xf32>
    tpu.vector_store %arg3[%c0_4, %c0_5], %4 {strides = array<i32>} : memref<2x128xf32, #tpu.memory_space<vmem>>, vector<2x128xf32>,
    return
  }
  func.func @transform_0(%arg0: i32) -> (i32, i32, i32) {
    %c0_i32 = arith.constant 0 : i32
    %c0_i32_0 = arith.constant 0 : i32
    %c0_i32_1 = arith.constant 0 : i32
    return %c0_i32, %c0_i32_0, %arg0 : i32, i32, i32
  }
  func.func @transform_1(%arg0: i32) -> (i32, i32) {
    %c0_i32 = arith.constant 0 : i32
    %c0_i32_0 = arith.constant 0 : i32
    %c0_i32_1 = arith.constant 0 : i32
    return %c0_i32, %c0_i32_0 : i32, i32
  }
  func.func @transform_2(%arg0: i32) -> (i32, i32) {
    %c0_i32 = arith.constant 0 : i32
    %c0_i32_0 = arith.constant 0 : i32
    return %c0_i32, %arg0 : i32, i32
  }
}

</mosaic_0001>

<bundles_post_ra>
// kernel: tpu_custom_call.1
= control target key start
LH: loop header
LB: loop body
LE: loop exit
PB: predicated region body
PF: predicated region fallthrough
CT: control target
= control target key end

     0   :  { %7 = vsyncpa [#allocation3], 0  ;;  %s606_s0 = inlined_call_operand.hbm [shape: f32[2,8,256], index: 0, kind: input, shape index: {}]   ;;  %s607_s1 = inlined_call_operand.vmem [shape: f32[2,1], index: 1, kind: input, shape index: {}]   ;;  %s608_s2 = inlined_call_operand.hbm [shape: f32[2,256], index: 2, kind: output, shape index: {}]  }
   0x1   :  { %9 = vsyncpa [#allocation3 + $0x1], 0 }
   0x2   :  { %10 = vsyncpa [#allocation4], 0 }
   0x3   :  { %12 = vsyncpa [#allocation4 + $0x1], 0  ;;  %s454_s9 = smov 0   ;;  %s456_s10 = smov 0  }
   0x4   :  { %s458_s11 = smov 0   ;;  %s460_s12 = smov 0  }
   0x5 LB: > { %s475_s13 = sadd.s32 4294967295, %s431_s12   ;;  %s276_s14 = sadd.s32 4294967294, %s431_s12   ;;  %s431_s12 = sphi %s460_s12, %s624_s12   ;;  %s427_s11 = sphi %s458_s11, %s623_s11   ;;  %s423_s10 = sphi %s456_s10, %s622_s10   ;;  %s419_s9 = sphi %s454_s9, %s621_s9  }
   0x6   : > { %s479_s15 = sadd.s32 1, %s431_s12   ;;  %s25_s16 = sadd.s32 1, %s427_s11 }
   0x7   : > { %s22_s17 = ssub.s32 %s431_s12, %s479_s15  ;;  %p32_p0 = scmp.ne.s32.totalorder %s427_s11, %s423_s10 }
   0x8   : > { %p23_p1 = scmp.eq.s32.totalorder %s22_s17, 0  ;;  %p33_p2 = scmp.eq.s32.totalorder %s431_s12, 0 }
   0x9   : > { %p38_p3 = scmp.ne.s32.totalorder %s423_s10, %s419_s9  ;;  %p39_p4 = scmp.eq.s32.totalorder %s475_s13, 0 }
   0xa   : > { %s491_s18 = scalar_select %p23_p1, %s427_s11, %s25_s16  }
   0xb   : > { %p493_p5 = por %p33_p2, %p32_p0  ;;  %p497_p6 = por %p39_p4, %p38_p3 }
   0xc   : > { %p83_p7 = scmp.eq.s32.totalorder %s475_s13, 1  ;;  %p89_p8 = scmp.eq.s32.totalorder %s276_s14, 1 }
   0xd   : > { %s612_s20 = scalar_select %p497_p6, 1, 0 }
   0xe   : > { %p300_p10 = scmp.lt.s32.totalorder %s431_s12, 2  ;;  %p504_p11 = por %p83_p7, %p32_p0 }
   0xf   : > { %p508_p12 = por %p89_p8, %p38_p3  ;;  %s112_s23 = sand.u32 1, %s427_s11  }
  0x10   : > { %s613_s21 = scalar_select %p504_p11, 1, 0 }
  0x11   : > { %s614_s22 = scalar_select %p508_p12, 1, 0 }
  0x12   : > { %s280_s24 = sshll.u32 %s431_s12, 7  ;;  %s279_s25 = sshll.u32 %s112_s23, 4 }
  0x13   : > { %s517_s28 = scalar_lea.hbm %s606_s0, %s280_s24  ;;  %s116_s29 = scalar_lea.vmem [#allocation2], %s279_s25 }
  0x14   : > { %s122_s30 = sshll.u32 %s116_s29, 4  ;;  %p521_p13 = pnand %p300_p10, %p493_p5  ;;  %s525_s30 = int_to_ptr.vmem [resolvable:$true] %s122_s30 }
  0x15   : > { %s528_s4 = scalar_lea.sflag [#allocation3], %s112_s23  ;;  %s339_s5 = scalar_lea.hbm %s517_s28, 256 }
  0x16   : > { %p340_p1 = scmp.ne.s32.totalorder %s517_s28, %s339_s5  ;;  %p341_p2 = pneg %p521_p13 }
  0x17   : > { %s344_s8 = scalar_lea.hbm %s606_s0, 512  ;;  %p345_p5 = scmp.lt.s32.totalorder %s517_s28, %s606_s0 }
  0x18   : > { %p342_p3 = pnand %p341_p2, %p340_p1  ;;  %p346_p7 = scmp.lt.s32.totalorder %s344_s8, %s339_s5 }
  0x1a   : > { %p343_p4 = pneg %p342_p3  ;;  %p347_p8 = por %p346_p7, %p345_p5 }
  0x1c   : > { %p348_p10 = pnand %p347_p8, %p343_p4 }
  0x1e   : > { %351 = shalt.err (!%p348_p10)
}
  0x1f   : > { %s352_s17 = scalar_lea.vmem %s525_s30, 256  ;;  %s433_s19 = smov [#allocation2]  }
  0x20   : > { %p353_p9 = scmp.ne.s32.totalorder %s525_s30, %s352_s17  ;;  %s357_s23 = sshll.u32 %s433_s19, 4  ;;  %s358_s23 = int_to_ptr.vmem [resolvable:$false] %s357_s23 }
  0x21   : > { %s359_s24 = scalar_lea.vmem %s358_s23, 512  ;;  %p360_p3 = scmp.lt.s32.totalorder %s525_s30, %s358_s23 }
  0x22   : > { %p355_p0 = pnand %p353_p9, %p341_p2  ;;  %p361_p12 = scmp.lt.s32.totalorder %s359_s24, %s352_s17 }
  0x24   : > { %p356_p1 = pneg %p355_p0  ;;  %p362_p11 = por %p361_p12, %p360_p3 }
  0x26   : > { %p363_p6 = pnand %p362_p11, %p356_p1 }
  0x28   : > { %366 = shalt.err (!%p363_p6)
}
  0x29   : > { %s434_s25 = smov 256   ;;  %s435_s26 = smov 128  }
  0x2a   : > { %s436_s27 = smov 8   ;;  %p130_p9 = scmp.lt.s32.totalorder %s431_s12, 3 }
  0x2b   : > { %295 = dma.hbm_to_vmem [thread:$0]  (!%p521_p13), %s517_s28, 256, %s525_s30, %s528_s4, %s434_s25, %s435_s26, %s436_s27  }
  0x2c   : > { %p616_p0 = scmp.ge.s32.totalorder %s431_s12, 1 }
  0x2e   : > { %p131_p2 = pnand %p616_p0, %p130_p9 }
  0x2f   : > { %s553_s29 = sand.u32 (!%p131_p2), 1, %s423_s10   ;;  %p617_p6 = scmp.ne.s32.totalorder (!%p131_p2), %s612_s20, 0 }
  0x30   : > { %134 = sbr.rel (%p131_p2) target bundleno = 200 (0xc8), region = 28  ;;  %s282_s5 = sshll.u32 (!%p131_p2), %s553_s29, 4 }
  0x31   : > { %s137_s6 = scalar_lea.sflag (!%p131_p2), [#allocation3], %s553_s29  ;;  %s140_s7 = scalar_lea.vmem (!%p131_p2), [#allocation2], %s282_s5 }
  0x35   : > { %410 = dma.done.wait (%p617_p6), %s137_s6, 256  }
  0x36   : > { %412 = vsyncadd (%p617_p6), %s137_s6, 4294967040  ;;  %v437_v0 = vmov 0   ;;  %v175_v1 = vld [vmem:[%s607_s1] sm:$0x3]  ;;  %v162_v2 = vld [vmem:[%s140_s7 + $0x8] sm:$0xff]  ;;  %s283_s20 = sshll.u32 %s553_s29, 1 }
  0x37   : > { %338 = vset.pattern.permute.xlu0 %v437_v0  ;;  %v161_v3 = vld [vmem:[%s140_s7] sm:$0xff]  ;;  %v169_v4 = vrot.slane %v162_v2, 4  ;;  %s285_s3 = sshll.u32 %s475_s13, 5  ;;  %s160_s4 = scalar_lea.vmem [#allocation5], %s283_s20  ;;  %vm188_vm0 = vcmask 1041409  }
  0x38   : > { %178 = vperm.xlu0 %338, %v175_v1   ;;  %v163_v5 = vrot.slane %v161_v3, 4  ;;  %s206_s8 = sshll.u32 %s160_s4, 4  ;;  %s569_s17 = scalar_lea.hbm %s608_s2, %s285_s3  ;;  %s207_s8 = int_to_ptr.vmem [resolvable:$true] %s206_s8 }
  0x39   : > { %v170_v6 = vadd.f32 %v169_v4, %v162_v2  ;;  %s193_s19 = scalar_lea.sflag [#allocation4], %s553_s29  ;;  %s367_s23 = scalar_lea.vmem %s207_s8, 32 }
  0x3a   : > { %v164_v7 = vadd.f32 %v163_v5, %v161_v3  ;;  %p368_p11 = scmp.ne.s32.totalorder %s207_s8, %s367_s23  ;;  %p618_p12 = scmp.ne.s32.totalorder %s613_s21, 0 }
  0x3b   : > { %v171_v8 = vrot.slane %v170_v6, 2  ;;  %s438_s13 = smov [#allocation5]  }
  0x3c   : > { %v165_v9 = vrot.slane %v164_v7, 2  ;;  %p369_p13 = pnand %p368_p11, %p618_p12  ;;  %s371_s24 = sshll.u32 %s438_s13, 4  ;;  %s372_s24 = int_to_ptr.vmem [resolvable:$false] %s371_s24 }
  0x3d   : > { %v172_v10 = vadd.f32 %v171_v8, %v170_v6  ;;  %s373_s25 = scalar_lea.vmem %s372_s24, 64  ;;  %p374_p5 = scmp.lt.s32.totalorder %s207_s8, %s372_s24 }
  0x3e   : > { %v166_v11 = vadd.f32 %v165_v9, %v164_v7  ;;  %p370_p4 = pneg %p369_p13  ;;  %p375_p7 = scmp.lt.s32.totalorder %s373_s25, %s367_s23 }
  0x3f   : > { %v173_v12 = vrot.slane %v172_v10, 1 }
  0x40   : > { %v167_v13 = vrot.slane %v166_v11, 1  ;;  %p376_p8 = por %p375_p7, %p374_p5 }
  0x41   : > { %v174_v14 = vadd.f32 %v173_v12, %v172_v10 }
  0x42   : > { %v168_v16 = vadd.f32 %v167_v13, %v166_v11  ;;  %p377_p10 = pnand %p376_p8, %p370_p4 }
  0xb3   : > { %v179_v15 = vpop.permute.xlu0 %178 }
  0xb4   : > { %v180_v17 = vrot.slane %v179_v15, 1  ;;  %v183_v19 = vadd.f32 %v179_v15, %v168_v16 }
  0xb6   : > { %v184_v18 = vadd.f32 %v180_v17, %v174_v14 }
  0xb8   : > { %v187_v20 = vrot.slane %v184_v18, 7 }
  0xba   : > { %v189_v21 = vsel %vm188_vm0, %v187_v20, %v183_v19 }
  0xbb   : > { %191 = vst [vmem:[%s160_s4] sm:$0x3] %v189_v21 }
  0xbc   : > { %380 = shalt.err (!%p377_p10)
}
  0xbd   : > { %s381_s26 = scalar_lea.hbm %s569_s17, 32  ;;  %s385_s5 = scalar_lea.hbm %s608_s2, 64 }
  0xbe   : > { %p382_p1 = scmp.ne.s32.totalorder %s569_s17, %s381_s26  ;;  %p386_p0 = scmp.lt.s32.totalorder %s569_s17, %s608_s2 }
  0xbf   : > { %p387_p2 = scmp.lt.s32.totalorder %s385_s5, %s381_s26 }
  0xc0   : > { %p383_p3 = pnand %p382_p1, %p618_p12 }
  0xc1   : > { %p388_p6 = por %p387_p2, %p386_p0 }
  0xc2   : > { %p384_p9 = pneg %p383_p3 }
  0xc4   : > { %p389_p11 = pnand %p388_p6, %p384_p9 }
  0xc6   : > { %392 = shalt.err (!%p389_p11)
}
  0xc7   : > { %290 = dma.vmem_to_hbm [thread:$0]  (%p618_p12), %s207_s8, 32, %s569_s17, %s193_s19  }
  0xc8 PF: > { %s218_s28 = sand.u32 1, %s419_s9   ;;  %p619_p13 = scmp.ne.s32.totalorder %s614_s22, 0 }
  0xc9   : > { %p620_p4 = scmp.ge.s32.totalorder %s431_s12, 2  ;;  %s219_s30 = scalar_lea.sflag [#allocation4], %s218_s28 }
  0xcb   : > { %p297_p5 = pnand %p620_p4, %p619_p13 }
  0xcd   : > { %p298_p7 = pneg %p297_p5 }
  0xcf   : > { %414 = dma.done.wait (%p298_p7), %s219_s30, 32  }
  0xd0   : > { %416 = vsyncadd (%p298_p7), %s219_s30, 4294967264  ;;  %p15_p8 = scmp.ge.s32.totalorder %s479_s15, 4   ;;  %s621_s9 = smov %s423_s10 }
  0xd1   : > { %s622_s10 = smov %s427_s11  ;;  %s623_s11 = smov %s491_s18 }
  0xd2   : > { %s624_s12 = smov %s479_s15  ;;  %17 = sbr.rel (!%p15_p8) target bundleno = 5 (0x5), region = 73 }
  0xd7   :  { %224 = vsyncpa [#allocation3], 1 }
  0xd8   :  { %226 = vsyncpa [#allocation3 + $0x1], 1 }
  0xd9   :  { %227 = vsyncpa [#allocation4], 1 }
  0xda   :  { %229 = vsyncpa [#allocation4 + $0x1], 1 }

</bundles_post_ra>
